<compile_context>
chip_gen: v7x
topology: tpu7x:2x2x1
jax: 0.10.0
libtpu: 0.0.40
codegen_flags: <defaults>
</compile_context>

<pallas_src>
import jax
import jax.numpy as jnp
from jax.experimental import pallas as pl
from jax.experimental.pallas import tpu as pltpu


def _round_up(x, m):
    return (x + m - 1) // m * m


def _pick_tile(dim, max_tile, align):
    """Pick (tile, padded_dim) for one dimension.

    Prefers (a) a single full-extent block (no (8,128) constraint, no padding),
    then (b) the largest `align`-multiple tile that divides `dim` exactly
    (no padding), and only then (c) falls back to `max_tile` with zero padding.
    """
    if dim <= max_tile:
        return dim, dim
    t = (max_tile // align) * align
    while t >= align:
        if dim % t == 0:
            return t, dim
        t -= align
    tile = (max_tile // align) * align
    return tile, _round_up(dim, tile)


def _linear_relu_kernel_single(x_ref, w_ref, b_ref, o_ref):
    # Single K tile: no accumulator scratch, no init/finalize gating.
    acc = jnp.dot(x_ref[...], w_ref[...], preferred_element_type=jnp.float32)
    out = acc + b_ref[...].astype(jnp.float32)
    o_ref[...] = jnp.maximum(out, 0.0).astype(o_ref.dtype)


def _linear_relu_kernel_acc(x_ref, w_ref, b_ref, o_ref, acc_ref):
    # x_ref  : (tm, tk)   row tile of the flattened input
    # w_ref  : (tk, tn)   weight tile, pre-transposed to (K, N) in the wrapper
    # b_ref  : (1,  tn)   bias tile (not re-DMA'd across K: block index fixed)
    # o_ref  : (tm, tn)   output tile
    # acc_ref: (tm, tn)   f32 accumulator, lives across K steps
    k = pl.program_id(2)

    @pl.when(k == 0)
    def _():
        acc_ref[...] = jnp.zeros_like(acc_ref)

    acc_ref[...] += jnp.dot(
        x_ref[...], w_ref[...], preferred_element_type=jnp.float32
    )

    @pl.when(k == pl.num_programs(2) - 1)
    def _():
        out = acc_ref[...] + b_ref[...].astype(jnp.float32)
        o_ref[...] = jnp.maximum(out, 0.0).astype(o_ref.dtype)


def linear_relu(x, weight, bias, *, tm=512, tn=512, tk=1024,
                mxu_dtype=jnp.bfloat16):
    """relu(x @ weight.T + bias) applied to the last axis of x.

    mxu_dtype: dtype fed to the MXU (cast once in the wrapper).  Default
    bfloat16 (f32 accumulate / f32 epilogue).  Pass None for the exact f32
    path that matches the PyTorch reference numerics.
    """
    *lead, K = x.shape
    N, Kw = weight.shape
    assert K == Kw, "in_features mismatch"

    out_dtype = x.dtype
    x2d = x.reshape(-1, K)
    M = x2d.shape[0]

    # --- tile selection (padding only when unavoidable) ---------------------
    tm_e, M_pad = _pick_tile(M, tm, 8)      # sublane axis of x / out blocks
    tn_e, N_pad = _pick_tile(N, tn, 128)    # lane axis of out / w.T blocks
    tk_e, K_pad = _pick_tile(K, tk, 128)    # lane axis of x, sublane of w.T

    # --- one-time layout plumbing in the wrapper ----------------------------
    feed_dtype = jnp.dtype(out_dtype) if mxu_dtype is None else jnp.dtype(mxu_dtype)
    x_p = x2d.astype(feed_dtype)
    w_p = weight.astype(feed_dtype).T          # (K, N), lane-dense RHS
    b_p = bias.reshape(1, N)

    if (M_pad, K_pad) != (M, K):
        x_p = jnp.pad(x_p, ((0, M_pad - M), (0, K_pad - K)))
    if (K_pad, N_pad) != (K, N):
        w_p = jnp.pad(w_p, ((0, K_pad - K), (0, N_pad - N)))
    if N_pad != N:
        b_p = jnp.pad(b_p, ((0, 0), (0, N_pad - N)))

    gm, gn, gk = M_pad // tm_e, N_pad // tn_e, K_pad // tk_e

    # --- VMEM budget: double-buffered tiles + accumulator, with headroom ----
    feed_bytes = feed_dtype.itemsize
    out_bytes = jnp.dtype(out_dtype).itemsize
    footprint = (
        2 * (tm_e * tk_e + tk_e * tn_e + tn_e) * feed_bytes
        + 2 * tm_e * tn_e * out_bytes
        + (0 if gk == 1 else tm_e * tn_e * 4)
    )
    vmem_limit = int(min(max(2 * footprint, 32 * 1024 * 1024),
                         64 * 1024 * 1024))

    cost = pl.CostEstimate(
        flops=2 * M_pad * N_pad * K_pad,
        transcendentals=0,
        bytes_accessed=(M_pad * K_pad + K_pad * N_pad) * feed_bytes
        + M_pad * N_pad * out_bytes
        + N_pad * 4,
    )

    if gk == 1:
        kernel = _linear_relu_kernel_single
        grid = (gm, gn)
        in_specs = [
            pl.BlockSpec((tm_e, tk_e), lambda i, j: (i, 0)),   # x tile
            pl.BlockSpec((tk_e, tn_e), lambda i, j: (0, j)),   # w.T tile
            pl.BlockSpec((1, tn_e), lambda i, j: (0, j)),      # bias tile
        ]
        out_specs = pl.BlockSpec((tm_e, tn_e), lambda i, j: (i, j))
        scratch_shapes = []
        dims = ("parallel", "parallel")
    else:
        kernel = _linear_relu_kernel_acc
        grid = (gm, gn, gk)
        in_specs = [
            pl.BlockSpec((tm_e, tk_e), lambda i, j, k: (i, k)),  # x tile
            pl.BlockSpec((tk_e, tn_e), lambda i, j, k: (k, j)),  # w.T tile
            pl.BlockSpec((1, tn_e), lambda i, j, k: (0, j)),     # bias tile
        ]
        out_specs = pl.BlockSpec((tm_e, tn_e), lambda i, j, k: (i, j))
        scratch_shapes = [pltpu.VMEM((tm_e, tn_e), jnp.float32)]
        dims = ("parallel", "parallel", "arbitrary")

    out2d = pl.pallas_call(
        kernel,
        out_shape=jax.ShapeDtypeStruct((M_pad, N_pad), out_dtype),
        grid_spec=pltpu.PrefetchScalarGridSpec(
            num_scalar_prefetch=0,
            grid=grid,
            in_specs=in_specs,
            out_specs=out_specs,
            scratch_shapes=scratch_shapes,
        ),
        compiler_params=pltpu.CompilerParams(
            dimension_semantics=dims,
            vmem_limit_bytes=vmem_limit,
        ),
        cost_estimate=cost,
    )(x_p, w_p, b_p)

    if (M_pad, N_pad) != (M, N):
        out2d = out2d[:M, :N]
    return out2d.reshape(*lead, N)


if __name__ == "__main__":
    key = jax.random.PRNGKey(0)
    kx, kw, kb = jax.random.split(key, 3)

    # Small shapes consistent with the module: linear acts on the last axis.
    B, C, H, K = 2, 4, 16, 32
    N = 32

    x = jax.random.normal(kx, (B, C, H, K), dtype=jnp.float32)
    weight = jax.random.normal(kw, (N, K), dtype=jnp.float32) * 0.1
    bias = jax.random.normal(kb, (N,), dtype=jnp.float32)

    ref = jnp.maximum(jnp.einsum("bchk,nk->bchn", x, weight) + bias, 0.0)

    # Exact f32 path (single K tile fast path, no padding needed).
    out_f32 = jax.block_until_ready(linear_relu(x, weight, bias, mxu_dtype=None))
    assert out_f32.shape == (B, C, H, N)
    assert jnp.allclose(out_f32, ref, atol=1e-4, rtol=1e-4)

    # Default fast path: bf16 MXU feed, f32 accumulate + epilogue.
    out_bf16 = jax.block_until_ready(linear_relu(x, weight, bias))
    assert jnp.allclose(out_bf16, ref, atol=5e-2, rtol=5e-2)

    # Exercise the multi-K-tile (accumulator) path with a forced small tk.
    K2, N2 = 256, 128
    x2 = jax.random.normal(kx, (B, C, H, K2), dtype=jnp.float32)
    w2 = jax.random.normal(kw, (N2, K2), dtype=jnp.float32) * 0.05
    b2 = jax.random.normal(kb, (N2,), dtype=jnp.float32)
    ref2 = jnp.maximum(jnp.einsum("bchk,nk->bchn", x2, w2) + b2, 0.0)
    out2 = jax.block_until_ready(linear_relu(x2, w2, b2, tk=128, mxu_dtype=None))
    assert jnp.allclose(out2, ref2, atol=1e-4, rtol=1e-4)

    print("KERNEL_OK")
</pallas_src>

<mosaic_0001>
module attributes {stable_mosaic.version = 11 : i64} {
  func.func @_linear_relu_kernel_single(%arg0: i32, %arg1: i32, %arg2: memref<128x32xf32, #tpu.memory_space<vmem>>, %arg3: memref<32x32xf32, #tpu.memory_space<vmem>>, %arg4: memref<1x32xf32, #tpu.memory_space<vmem>>, %arg5: memref<128x32xf32, #tpu.memory_space<vmem>>) attributes {dimension_semantics = [#tpu.dimension_semantics<parallel>, #tpu.dimension_semantics<parallel>], iteration_bounds = array<i64: 1, 1>, scalar_prefetch = 0 : i64, scratch_operands = 0 : i64, tpu.core_type = #tpu.core_type<tc>, window_params = [{transform_indices = @transform_0, window_bounds = array<i64: 128, 32>}, {transform_indices = @transform_1, window_bounds = array<i64: 32, 32>}, {transform_indices = @transform_2, window_bounds = array<i64: 1, 32>}, {transform_indices = @transform_3, window_bounds = array<i64: 128, 32>}]} {
    %c0 = arith.constant 0 : index
    %c0_0 = arith.constant 0 : index
    %0 = vector.load %arg2[%c0, %c0_0] : memref<128x32xf32, #tpu.memory_space<vmem>>, vector<128x32xf32>
    %c0_1 = arith.constant 0 : index
    %c0_2 = arith.constant 0 : index
    %1 = vector.load %arg3[%c0_1, %c0_2] : memref<32x32xf32, #tpu.memory_space<vmem>>, vector<32x32xf32>
    %cst = arith.constant dense<0.000000e+00> : vector<128x32xf32>
    %2 = tpu.matmul %0, %1, %cst {dimension_numbers = #tpu.dot_dimension_numbers<[1], [0], [0], [1], [0, 0, 1, 1], [], []>} : vector<128x32xf32>, vector<32x32xf32>, vector<128x32xf32> -> vector<128x32xf32>
    %c0_3 = arith.constant 0 : index
    %c0_4 = arith.constant 0 : index
    %3 = vector.load %arg4[%c0_3, %c0_4] : memref<1x32xf32, #tpu.memory_space<vmem>>, vector<1x32xf32>
    %4 = vector.broadcast %3 : vector<1x32xf32> to vector<128x32xf32>
    %5 = arith.addf %2, %4 : vector<128x32xf32>
    %cst_5 = arith.constant 0.000000e+00 : f32
    %6 = vector.broadcast %cst_5 : f32 to vector<128x32xf32>
    %7 = arith.maximumf %5, %6 : vector<128x32xf32>
    %c0_6 = arith.constant 0 : index
    %c0_7 = arith.constant 0 : index
    %8 = vector.load %arg5[%c0_6, %c0_7] : memref<128x32xf32, #tpu.memory_space<vmem>>, vector<128x32xf32>
    tpu.vector_store %arg5[%c0_6, %c0_7], %7 {strides = array<i32>} : memref<128x32xf32, #tpu.memory_space<vmem>>, vector<128x32xf32>,
    return
  }
  func.func @transform_0(%arg0: i32, %arg1: i32) -> (i32, i32) {
    %c0_i32 = arith.constant 0 : i32
    %c0_i32_0 = arith.constant 0 : i32
    return %arg0, %c0_i32 : i32, i32
  }
  func.func @transform_1(%arg0: i32, %arg1: i32) -> (i32, i32) {
    %c0_i32 = arith.constant 0 : i32
    %c0_i32_0 = arith.constant 0 : i32
    return %c0_i32, %arg1 : i32, i32
  }
  func.func @transform_2(%arg0: i32, %arg1: i32) -> (i32, i32) {
    %c0_i32 = arith.constant 0 : i32
    %c0_i32_0 = arith.constant 0 : i32
    return %c0_i32, %arg1 : i32, i32
  }
  func.func @transform_3(%arg0: i32, %arg1: i32) -> (i32, i32) {
    %c0_i32 = arith.constant 0 : i32
    return %arg0, %arg1 : i32, i32
  }
}

</mosaic_0001>

<bundles_post_ra>
// kernel: tpu_custom_call.1
= control target key start
LH: loop header
LB: loop body
LE: loop exit
PB: predicated region body
PF: predicated region fallthrough
CT: control target
= control target key end

     0   :  { %vm41_vm0 = vcmask 261120   ;;  %s515_s1 = inlined_call_operand.vmem [shape: f32[32,32], index: 1, kind: input, shape index: {}]   ;;  %s516_s0 = inlined_call_operand.vmem [shape: f32[128,32], index: 0, kind: input, shape index: {}]   ;;  %s517_s2 = inlined_call_operand.vmem [shape: f32[1,32], index: 2, kind: input, shape index: {}]   ;;  %s518_s3 = inlined_call_operand.vmem [shape: f32[128,32], index: 3, kind: output, shape index: {}]  }
   0x1   :  { %v30_v0 = vld [vmem:[%s515_s1] sm:$0xff]  ;;  %v31_v1 = vld [vmem:[%s515_s1 + $0x8] sm:$0xff]  ;;  %v32_v2 = vld [vmem:[%s515_s1 + $0x10] sm:$0xff] }
   0x2   :  { %v340_v3 = vpack.c.bf16 %v31_v1, %v30_v0  ;;  %v33_v4 = vld [vmem:[%s515_s1 + $0x18] sm:$0xff]  ;;  %v14_v5 = vld [vmem:[%s516_s0] sm:$0xff]  ;;  %v15_v8 = vld [vmem:[%s516_s0 + $0x8] sm:$0xff] }
   0x3   :  { %v22_v6 = vld [vmem:[%s516_s0 + $0x40] sm:$0xff]  ;;  %v344_v7 = vpack.c.bf16 %v33_v4, %v32_v2  ;;  %316 = vmatprep.mubr.msk.f32.mxu0 %vm41_vm0, %v14_v5  ;;  %v23_v9 = vld [vmem:[%s516_s0 + $0x48] sm:$0xff]  ;;  %v16_v10 = vld [vmem:[%s516_s0 + $0x10] sm:$0xff] }
   0x4   :  { %328 = vmatprep.mubr.msk.f32.mxu1 %vm41_vm0, %v22_v6  ;;  %341 = vmatprep.subr.bf16.mxu0 %v340_v3  ;;  %v24_v11 = vld [vmem:[%s516_s0 + $0x50] sm:$0xff]  ;;  %v17_v12 = vld [vmem:[%s516_s0 + $0x18] sm:$0xff]  ;;  %v18_v14 = vld [vmem:[%s516_s0 + $0x20] sm:$0xff] }
   0x5   :  { %348 = vmatprep.subr.bf16.mxu1 %v340_v3  ;;  %343 = vmatpush3.bf16.msra.mxu0 %v340_v3  ;;  %v25_v13 = vld [vmem:[%s516_s0 + $0x58] sm:$0xff]  ;;  %v26_v15 = vld [vmem:[%s516_s0 + $0x60] sm:$0xff]  ;;  %v19_v16 = vld [vmem:[%s516_s0 + $0x28] sm:$0xff] }
   0x6   :  { %350 = vmatpush3.bf16.msra.mxu1 %v340_v3  ;;  %345 = vmatprep.subr.bf16.mxu0 %v344_v7  ;;  %v27_v17 = vld [vmem:[%s516_s0 + $0x68] sm:$0xff]  ;;  %v20_v18 = vld [vmem:[%s516_s0 + $0x30] sm:$0xff]  ;;  %v21_v20 = vld [vmem:[%s516_s0 + $0x38] sm:$0xff] }
   0x7   :  { %349 = vmatprep.subr.bf16.mxu1 %v344_v7  ;;  %v28_v19 = vld [vmem:[%s516_s0 + $0x70] sm:$0xff]  ;;  %v29_v21 = vld [vmem:[%s516_s0 + $0x78] sm:$0xff]  ;;  %v271_v22 = vld [vmem:[%s517_s2] ss:$0 sm:$0xff] }
   0x9   :  { %347 = vmatpush3.bf16.msra.mxu0 %v344_v7 }
   0xa   :  { %351 = vmatpush3.bf16.msra.mxu1 %v344_v7 }
   0xc   :  { %317 = vmatmul.mubr.msk.f32.vlgmr.msra.gmra.mrb[0].mxu0 %vm41_vm0, %v15_v8 }
   0xd   :  { %329 = vmatmul.mubr.msk.f32.vlgmr.msra.gmra.mrb[0].mxu1 %vm41_vm0, %v23_v9  ;;  %319 = vmatprep.mubr.msk.f32.mxu0 %vm41_vm0, %v16_v10 }
   0xe   :  { %331 = vmatprep.mubr.msk.f32.mxu1 %vm41_vm0, %v24_v11 }
  0x10   :  { %320 = vmatmul.mubr.msk.f32.gmra.mrb[2].mxu0 %vm41_vm0, %v17_v12 }
  0x11   :  { %332 = vmatmul.mubr.msk.f32.gmra.mrb[2].mxu1 %vm41_vm0, %v25_v13  ;;  %322 = vmatprep.mubr.msk.f32.mxu0 %vm41_vm0, %v18_v14 }
  0x12   :  { %334 = vmatprep.mubr.msk.f32.mxu1 %vm41_vm0, %v26_v15 }
  0x14   :  { %323 = vmatmul.mubr.msk.f32.gmra.mrb[4].mxu0 %vm41_vm0, %v19_v16 }
  0x15   :  { %335 = vmatmul.mubr.msk.f32.gmra.mrb[4].mxu1 %vm41_vm0, %v27_v17  ;;  %325 = vmatprep.mubr.msk.f32.mxu0 %vm41_vm0, %v20_v18 }
  0x16   :  { %337 = vmatprep.mubr.msk.f32.mxu1 %vm41_vm0, %v28_v19 }
  0x18   :  { %326 = vmatmul.mubr.msk.f32.gmra.mrb[6].mxu0 %vm41_vm0, %v21_v20 }
  0x19   :  { %338 = vmatmul.mubr.msk.f32.gmra.mrb[6].mxu1 %vm41_vm0, %v29_v21 }
  0xdf   :  { %v318_v23 = vpop.f32.mrb[0].mxu0 }
  0xe0   :  { %v330_v24 = vpop.f32.mrb[0].mxu1  ;;  %v162_v25 = vadd.f32 %v318_v23, %v271_v22  ;;  %v156_v27 = vpop.f32.mrb[1].mxu0 }
  0xe1   :  { %v202_v26 = vadd.f32 %v330_v24, %v271_v22  ;;  %v196_v28 = vpop.f32.mrb[1].mxu1  ;;  %v157_v29 = vadd.f32 %v271_v22, %v156_v27 }
  0xe2   :  { %v197_v30 = vadd.f32 %v271_v22, %v196_v28  ;;  %v236_v31 = vmax.f32 %v162_v25, 0.0 }
  0xe3   :  { %v244_v32 = vmax.f32 %v202_v26, 0.0  ;;  %v235_v33 = vmax.f32 %v157_v29, 0.0  ;;  %v321_v35 = vpop.f32.mrb[2].mxu0 }
  0xe4   :  { %v243_v34 = vmax.f32 %v197_v30, 0.0  ;;  %v333_v36 = vpop.f32.mrb[2].mxu1  ;;  %252 = vst.msk [vmem:[%s518_s3 + $0x8] sm:$0xff] %vm41_vm0, %v236_v31  ;;  %v172_v37 = vadd.f32 %v321_v35, %v271_v22  ;;  %v166_v39 = vpop.f32.mrb[3].mxu0 }
  0xe5   :  { %260 = vst.msk [vmem:[%s518_s3 + $0x48] sm:$0xff] %vm41_vm0, %v244_v32  ;;  %v212_v38 = vadd.f32 %v333_v36, %v271_v22  ;;  %v206_v40 = vpop.f32.mrb[3].mxu1  ;;  %251 = vst.msk [vmem:[%s518_s3] sm:$0xff] %vm41_vm0, %v235_v33  ;;  %v167_v41 = vadd.f32 %v271_v22, %v166_v39 }
  0xe6   :  { %259 = vst.msk [vmem:[%s518_s3 + $0x40] sm:$0xff] %vm41_vm0, %v243_v34  ;;  %v207_v42 = vadd.f32 %v271_v22, %v206_v40  ;;  %v238_v43 = vmax.f32 %v172_v37, 0.0 }
  0xe7   :  { %v246_v44 = vmax.f32 %v212_v38, 0.0  ;;  %v237_v45 = vmax.f32 %v167_v41, 0.0  ;;  %v324_v47 = vpop.f32.mrb[4].mxu0 }
  0xe8   :  { %v245_v46 = vmax.f32 %v207_v42, 0.0  ;;  %v336_v48 = vpop.f32.mrb[4].mxu1  ;;  %254 = vst.msk [vmem:[%s518_s3 + $0x18] sm:$0xff] %vm41_vm0, %v238_v43  ;;  %v182_v49 = vadd.f32 %v324_v47, %v271_v22  ;;  %v176_v51 = vpop.f32.mrb[5].mxu0 }
  0xe9   :  { %262 = vst.msk [vmem:[%s518_s3 + $0x58] sm:$0xff] %vm41_vm0, %v246_v44  ;;  %v222_v50 = vadd.f32 %v336_v48, %v271_v22  ;;  %v216_v52 = vpop.f32.mrb[5].mxu1  ;;  %253 = vst.msk [vmem:[%s518_s3 + $0x10] sm:$0xff] %vm41_vm0, %v237_v45  ;;  %v177_v53 = vadd.f32 %v271_v22, %v176_v51 }
  0xea   :  { %261 = vst.msk [vmem:[%s518_s3 + $0x50] sm:$0xff] %vm41_vm0, %v245_v46  ;;  %v217_v54 = vadd.f32 %v271_v22, %v216_v52  ;;  %v240_v55 = vmax.f32 %v182_v49, 0.0 }
  0xeb   :  { %v248_v56 = vmax.f32 %v222_v50, 0.0  ;;  %v239_v57 = vmax.f32 %v177_v53, 0.0  ;;  %v327_v59 = vpop.f32.mrb[6].mxu0 }
  0xec   :  { %v247_v58 = vmax.f32 %v217_v54, 0.0  ;;  %v339_v60 = vpop.f32.mrb[6].mxu1  ;;  %256 = vst.msk [vmem:[%s518_s3 + $0x28] sm:$0xff] %vm41_vm0, %v240_v55  ;;  %v192_v61 = vadd.f32 %v327_v59, %v271_v22  ;;  %v186_v63 = vpop.f32.mrb[7].mxu0 }
  0xed   :  { %264 = vst.msk [vmem:[%s518_s3 + $0x68] sm:$0xff] %vm41_vm0, %v248_v56  ;;  %v232_v62 = vadd.f32 %v339_v60, %v271_v22  ;;  %v226_v0 = vpop.f32.mrb[7].mxu1  ;;  %255 = vst.msk [vmem:[%s518_s3 + $0x20] sm:$0xff] %vm41_vm0, %v239_v57  ;;  %v187_v1 = vadd.f32 %v271_v22, %v186_v63 }
  0xee   :  { %263 = vst.msk [vmem:[%s518_s3 + $0x60] sm:$0xff] %vm41_vm0, %v247_v58  ;;  %v227_v2 = vadd.f32 %v271_v22, %v226_v0  ;;  %v242_v3 = vmax.f32 %v192_v61, 0.0 }
  0xef   :  { %v250_v4 = vmax.f32 %v232_v62, 0.0  ;;  %v241_v5 = vmax.f32 %v187_v1, 0.0 }
  0xf0   :  { %v249_v6 = vmax.f32 %v227_v2, 0.0  ;;  %258 = vst.msk [vmem:[%s518_s3 + $0x38] sm:$0xff] %vm41_vm0, %v242_v3 }
  0xf1   :  { %266 = vst.msk [vmem:[%s518_s3 + $0x78] sm:$0xff] %vm41_vm0, %v250_v4  ;;  %257 = vst.msk [vmem:[%s518_s3 + $0x30] sm:$0xff] %vm41_vm0, %v241_v5 }
  0xf2   :  { %265 = vst.msk [vmem:[%s518_s3 + $0x70] sm:$0xff] %vm41_vm0, %v249_v6 }

</bundles_post_ra>
